<compile_context>
chip_gen: v5e
topology: v5e:2x2
jax: 0.10.0
libtpu: 0.0.40
codegen_flags: <defaults>
</compile_context>

<pallas_src>
import jax
import jax.numpy as jnp
from jax.experimental import pallas as pl
from jax.experimental.pallas import tpu as pltpu

HIDDEN = 64
LANE = 128


def _round_up(x: int, m: int) -> int:
    return ((x + m - 1) // m) * m


def _pad2(a, rows: int, cols: int, dtype):
    r, c = a.shape
    return jnp.pad(a, ((0, rows - r), (0, cols - c))).astype(dtype)


def _make_kernel(n_actions: int):
    """Kernel closes over the static n_actions (lane boundary mean|log_std)."""

    def kernel(x_ref, w1_ref, b1_ref, w2_ref, b2_ref, wh_ref, bh_ref, out_ref):
        # x arrives f32 (TM, obs); cast to bf16 in-kernel (VPU, hidden under MXU).
        x = x_ref[...].astype(jnp.bfloat16)
        h = jnp.dot(x, w1_ref[...], preferred_element_type=jnp.float32) + b1_ref[...]
        h = jnp.maximum(h, 0.0).astype(jnp.bfloat16)
        h = jnp.dot(h, w2_ref[...], preferred_element_type=jnp.float32) + b2_ref[...]
        h = jnp.maximum(h, 0.0).astype(jnp.bfloat16)

        # Fused heads: one (TM, HEAD_PAD) matmul; lanes [0, n_actions) = mean,
        # lanes [n_actions, 2*n_actions) = log_std, rest = padding (discarded).
        head = jnp.dot(h, wh_ref[...], preferred_element_type=jnp.float32) + bh_ref[...]
        lane = jax.lax.broadcasted_iota(jnp.int32, head.shape, 1)
        out_ref[...] = jnp.where(lane >= n_actions, jnp.exp(head), head).astype(out_ref.dtype)

    return kernel


def actor_net_forward(state, params, tm: int = 1024, out_dtype=jnp.bfloat16):
    """state: (B, obs_size) array. params: dict of (in,out) weights / (1,out) biases.

    Returns (action_mean, action_std), each (B, n_actions) float32.
    """
    B, obs = state.shape
    n_actions = params["wm"].shape[1]

    hid_pad = _round_up(HIDDEN, LANE)            # 128
    head_pad = _round_up(2 * n_actions, LANE)    # packed mean|log_std, 128-lane padded

    # Batch tiling: large tiles to amortize ~0.35us/step grid overhead, but cap
    # at ~ceil(B/2) rows so the grid has >= 2 "parallel" steps (v7x dual-TC).
    tm = max(8, (tm // 8) * 8)
    half_batch_tile = _round_up(-(-B // 2), 8)
    tm_eff = min(tm, _round_up(B, 8), max(half_batch_tile, 8))
    b_pad = _round_up(B, tm_eff)
    grid = (b_pad // tm_eff,)

    # One-time padding / packing / bf16 cast of parameters (zero padding is
    # numerically inert: padded rows/cols contribute 0, ReLU(0)=0).
    w1 = _pad2(params["w1"], obs, hid_pad, jnp.bfloat16)
    b1 = _pad2(params["b1"], 1, hid_pad, jnp.float32)
    w2 = _pad2(params["w2"], hid_pad, hid_pad, jnp.bfloat16)
    b2 = _pad2(params["b2"], 1, hid_pad, jnp.float32)
    wh = _pad2(jnp.concatenate([params["wm"], params["ws"]], axis=1),
               hid_pad, head_pad, jnp.bfloat16)
    bh = _pad2(jnp.concatenate([params["bm"], params["bs"]], axis=1),
               1, head_pad, jnp.float32)

    # state.float(); no lane padding, no bf16 HBM pass. Batch rows padded only
    # if B is not a multiple of the tile (padded rows are sliced away below).
    x = state.astype(jnp.float32)
    if b_pad != B:
        x = jnp.pad(x, ((0, b_pad - B), (0, 0)))

    const = lambda i: (0, 0)          # weights/biases: VMEM-resident across the grid
    row_blk = lambda i: (i, 0)        # activations/outputs: tiled over batch

    out_itemsize = jnp.dtype(out_dtype).itemsize
    flops = 2 * b_pad * (obs * hid_pad + hid_pad * hid_pad + hid_pad * head_pad)
    bytes_accessed = int(
        b_pad * obs * 4
        + (w1.size + w2.size + wh.size) * 2
        + (b1.size + b2.size + bh.size) * 4
        + b_pad * head_pad * out_itemsize
    )

    # Scoped-VMEM budget: double-buffered x/out tiles + (double-buffered) params.
    vmem_need = (
        2 * tm_eff * obs * 4
        + 2 * tm_eff * head_pad * out_itemsize
        + 2 * (w1.size + w2.size + wh.size) * 2
        + 2 * (b1.size + b2.size + bh.size) * 4
    )
    vmem_limit = int(min(48 << 20, max(16 << 20, (vmem_need * 3) // 2 + (1 << 20))))

    out = pl.pallas_call(
        _make_kernel(n_actions),
        out_shape=jax.ShapeDtypeStruct((b_pad, head_pad), out_dtype),
        grid=grid,
        in_specs=[
            pl.BlockSpec((tm_eff, obs), row_blk),      # last dim == full dim -> OK
            pl.BlockSpec((obs, hid_pad), const),
            pl.BlockSpec((1, hid_pad), const),
            pl.BlockSpec((hid_pad, hid_pad), const),
            pl.BlockSpec((1, hid_pad), const),
            pl.BlockSpec((hid_pad, head_pad), const),
            pl.BlockSpec((1, head_pad), const),
        ],
        out_specs=pl.BlockSpec((tm_eff, head_pad), row_blk),
        compiler_params=pltpu.CompilerParams(
            dimension_semantics=("parallel",),          # v7x: use both TensorCores
            vmem_limit_bytes=vmem_limit),
        cost_estimate=pl.CostEstimate(
            flops=flops,
            transcendentals=b_pad * head_pad,
            bytes_accessed=bytes_accessed),
    )(x, w1, b1, w2, b2, wh, bh)

    # Single slice of the slab, split afterwards; cast back to f32 on the small result.
    packed = out[:B, :2 * n_actions].astype(jnp.float32)
    return packed[:, :n_actions], packed[:, n_actions:]


def init_params(key, obs_size, n_actions):
    """PyTorch-Linear-style init (uniform +/- 1/sqrt(fan_in)), weights stored (in, out)."""
    ks = jax.random.split(key, 8)

    def lin(kw, kb, fan_in, fan_out):
        bound = 1.0 / jnp.sqrt(fan_in)
        w = jax.random.uniform(kw, (fan_in, fan_out), jnp.float32, -bound, bound)
        b = jax.random.uniform(kb, (1, fan_out), jnp.float32, -bound, bound)
        return w, b

    w1, b1 = lin(ks[0], ks[1], obs_size, HIDDEN)
    w2, b2 = lin(ks[2], ks[3], HIDDEN, HIDDEN)
    wm, bm = lin(ks[4], ks[5], HIDDEN, n_actions)
    ws, bs = lin(ks[6], ks[7], HIDDEN, n_actions)
    return dict(w1=w1, b1=b1, w2=w2, b2=b2, wm=wm, bm=bm, ws=ws, bs=bs)


def actor_net_reference(state, p, match_bf16=False):
    """Pure-JAX reference. match_bf16=True mirrors the kernel's bf16 MXU operands."""
    op_dt = jnp.bfloat16 if match_bf16 else jnp.float32

    def lin(h, w, b):
        return jnp.dot(h.astype(op_dt), w.astype(op_dt),
                       preferred_element_type=jnp.float32) + b

    x = state.astype(jnp.float32)
    h = jnp.maximum(lin(x, p["w1"], p["b1"]), 0.0)
    h = jnp.maximum(lin(h, p["w2"], p["b2"]), 0.0)
    return lin(h, p["wm"], p["bm"]), jnp.exp(lin(h, p["ws"], p["bs"]))


if __name__ == "__main__":
    key = jax.random.PRNGKey(0)
    k_param, k_state = jax.random.split(key)

    batch = 8
    obs_size = 32
    n_actions = 8

    params = init_params(k_param, obs_size, n_actions)
    state = jax.random.normal(k_state, (batch, obs_size), dtype=jnp.float32)

    mean, std = actor_net_forward(state, params)
    mean, std = jax.block_until_ready((mean, std))

    assert mean.shape == (batch, n_actions) and std.shape == (batch, n_actions)
    assert bool(jnp.all(std > 0))
    assert bool(jnp.all(jnp.isfinite(mean))) and bool(jnp.all(jnp.isfinite(std)))

    # Check against a reference using the same bf16 MXU operands (the kernel's
    # slab is bf16, so allow bf16-rounding of the final values: rel ~2^-9).
    ref_mean_bf, ref_std_bf = actor_net_reference(state, params, match_bf16=True)
    assert jnp.allclose(mean, ref_mean_bf, atol=1e-2, rtol=1e-2)
    assert jnp.allclose(std, ref_std_bf, atol=1e-2, rtol=1e-2)

    # Loose check against the exact f32 PyTorch-equivalent math.
    ref_mean, ref_std = actor_net_reference(state, params, match_bf16=False)
    assert jnp.allclose(mean, ref_mean, atol=5e-2, rtol=5e-2)
    assert jnp.allclose(std, ref_std, atol=5e-2, rtol=5e-2)

    print("KERNEL_OK")
</pallas_src>

<mosaic_0001>
module attributes {stable_mosaic.version = 11 : i64} {
  func.func @kernel(%arg0: i32, %arg1: memref<8x32xf32, #tpu.memory_space<vmem>>, %arg2: memref<32x128xbf16, #tpu.memory_space<vmem>>, %arg3: memref<1x128xf32, #tpu.memory_space<vmem>>, %arg4: memref<128x128xbf16, #tpu.memory_space<vmem>>, %arg5: memref<1x128xf32, #tpu.memory_space<vmem>>, %arg6: memref<128x128xbf16, #tpu.memory_space<vmem>>, %arg7: memref<1x128xf32, #tpu.memory_space<vmem>>, %arg8: memref<8x128xbf16, #tpu.memory_space<vmem>>) attributes {dimension_semantics = [#tpu.dimension_semantics<parallel>], iteration_bounds = array<i64: 1>, scalar_prefetch = 0 : i64, scratch_operands = 0 : i64, tpu.core_type = #tpu.core_type<tc>, window_params = [{transform_indices = @transform_0, window_bounds = array<i64: 8, 32>}, {pipeline_mode = #tpu.pipeline_mode<synchronous>, transform_indices = @transform_1, window_bounds = array<i64: 32, 128>}, {pipeline_mode = #tpu.pipeline_mode<synchronous>, transform_indices = @transform_2, window_bounds = array<i64: 1, 128>}, {pipeline_mode = #tpu.pipeline_mode<synchronous>, transform_indices = @transform_3, window_bounds = array<i64: 128, 128>}, {pipeline_mode = #tpu.pipeline_mode<synchronous>, transform_indices = @transform_4, window_bounds = array<i64: 1, 128>}, {pipeline_mode = #tpu.pipeline_mode<synchronous>, transform_indices = @transform_5, window_bounds = array<i64: 128, 128>}, {pipeline_mode = #tpu.pipeline_mode<synchronous>, transform_indices = @transform_6, window_bounds = array<i64: 1, 128>}, {transform_indices = @transform_7, window_bounds = array<i64: 8, 128>}]} {
    %c0 = arith.constant 0 : index
    %c0_0 = arith.constant 0 : index
    %0 = vector.load %arg1[%c0, %c0_0] : memref<8x32xf32, #tpu.memory_space<vmem>>, vector<8x32xf32>
    %1 = arith.truncf %0 : vector<8x32xf32> to vector<8x32xbf16>
    %c0_1 = arith.constant 0 : index
    %c0_2 = arith.constant 0 : index
    %2 = vector.load %arg2[%c0_1, %c0_2] : memref<32x128xbf16, #tpu.memory_space<vmem>>, vector<32x128xbf16>
    %cst = arith.constant dense<0.000000e+00> : vector<8x128xf32>
    %3 = tpu.matmul %1, %2, %cst {dimension_numbers = #tpu.dot_dimension_numbers<[1], [0], [0], [1], [0, 0, 1, 1], [], []>} : vector<8x32xbf16>, vector<32x128xbf16>, vector<8x128xf32> -> vector<8x128xf32>
    %c0_3 = arith.constant 0 : index
    %c0_4 = arith.constant 0 : index
    %4 = vector.load %arg3[%c0_3, %c0_4] : memref<1x128xf32, #tpu.memory_space<vmem>>, vector<1x128xf32>
    %5 = vector.broadcast %4 : vector<1x128xf32> to vector<8x128xf32>
    %6 = arith.addf %3, %5 : vector<8x128xf32>
    %cst_5 = arith.constant 0.000000e+00 : f32
    %7 = vector.broadcast %cst_5 : f32 to vector<8x128xf32>
    %8 = arith.maximumf %6, %7 : vector<8x128xf32>
    %9 = arith.truncf %8 : vector<8x128xf32> to vector<8x128xbf16>
    %c0_6 = arith.constant 0 : index
    %c0_7 = arith.constant 0 : index
    %10 = vector.load %arg4[%c0_6, %c0_7] : memref<128x128xbf16, #tpu.memory_space<vmem>>, vector<128x128xbf16>
    %cst_8 = arith.constant dense<0.000000e+00> : vector<8x128xf32>
    %11 = tpu.matmul %9, %10, %cst_8 {dimension_numbers = #tpu.dot_dimension_numbers<[1], [0], [0], [1], [0, 0, 1, 1], [], []>} : vector<8x128xbf16>, vector<128x128xbf16>, vector<8x128xf32> -> vector<8x128xf32>
    %c0_9 = arith.constant 0 : index
    %c0_10 = arith.constant 0 : index
    %12 = vector.load %arg5[%c0_9, %c0_10] : memref<1x128xf32, #tpu.memory_space<vmem>>, vector<1x128xf32>
    %13 = vector.broadcast %12 : vector<1x128xf32> to vector<8x128xf32>
    %14 = arith.addf %11, %13 : vector<8x128xf32>
    %cst_11 = arith.constant 0.000000e+00 : f32
    %15 = vector.broadcast %cst_11 : f32 to vector<8x128xf32>
    %16 = arith.maximumf %14, %15 : vector<8x128xf32>
    %17 = arith.truncf %16 : vector<8x128xf32> to vector<8x128xbf16>
    %c0_12 = arith.constant 0 : index
    %c0_13 = arith.constant 0 : index
    %18 = vector.load %arg6[%c0_12, %c0_13] : memref<128x128xbf16, #tpu.memory_space<vmem>>, vector<128x128xbf16>
    %cst_14 = arith.constant dense<0.000000e+00> : vector<8x128xf32>
    %19 = tpu.matmul %17, %18, %cst_14 {dimension_numbers = #tpu.dot_dimension_numbers<[1], [0], [0], [1], [0, 0, 1, 1], [], []>} : vector<8x128xbf16>, vector<128x128xbf16>, vector<8x128xf32> -> vector<8x128xf32>
    %c0_15 = arith.constant 0 : index
    %c0_16 = arith.constant 0 : index
    %20 = vector.load %arg7[%c0_15, %c0_16] : memref<1x128xf32, #tpu.memory_space<vmem>>, vector<1x128xf32>
    %21 = vector.broadcast %20 : vector<1x128xf32> to vector<8x128xf32>
    %22 = arith.addf %19, %21 : vector<8x128xf32>
    %23 = tpu.iota {dimensions = array<i32: 1>} : vector<8x128xi32>
    %c8_i32 = arith.constant 8 : i32
    %24 = vector.broadcast %c8_i32 : i32 to vector<8x128xi32>
    %25 = arith.cmpi sge, %23, %24 : vector<8x128xi32>
    %26 = math.exp %22 : vector<8x128xf32>
    %27 = arith.select %25, %26, %22 : vector<8x128xi1>, vector<8x128xf32>
    %28 = arith.truncf %27 : vector<8x128xf32> to vector<8x128xbf16>
    %c0_17 = arith.constant 0 : index
    %c0_18 = arith.constant 0 : index
    %29 = vector.load %arg8[%c0_17, %c0_18] : memref<8x128xbf16, #tpu.memory_space<vmem>>, vector<8x128xbf16>
    tpu.vector_store %arg8[%c0_17, %c0_18], %28 {strides = array<i32>} : memref<8x128xbf16, #tpu.memory_space<vmem>>, vector<8x128xbf16>,
    return
  }
  func.func @transform_0(%arg0: i32) -> (i32, i32) {
    %c0_i32 = arith.constant 0 : i32
    %c0_i32_0 = arith.constant 0 : i32
    return %arg0, %c0_i32 : i32, i32
  }
  func.func @transform_1(%arg0: i32) -> (i32, i32) {
    %c0_i32 = arith.constant 0 : i32
    %c0_i32_0 = arith.constant 0 : i32
    %c0_i32_1 = arith.constant 0 : i32
    return %c0_i32, %c0_i32_0 : i32, i32
  }
  func.func @transform_2(%arg0: i32) -> (i32, i32) {
    %c0_i32 = arith.constant 0 : i32
    %c0_i32_0 = arith.constant 0 : i32
    %c0_i32_1 = arith.constant 0 : i32
    return %c0_i32, %c0_i32_0 : i32, i32
  }
  func.func @transform_3(%arg0: i32) -> (i32, i32) {
    %c0_i32 = arith.constant 0 : i32
    %c0_i32_0 = arith.constant 0 : i32
    %c0_i32_1 = arith.constant 0 : i32
    return %c0_i32, %c0_i32_0 : i32, i32
  }
  func.func @transform_4(%arg0: i32) -> (i32, i32) {
    %c0_i32 = arith.constant 0 : i32
    %c0_i32_0 = arith.constant 0 : i32
    %c0_i32_1 = arith.constant 0 : i32
    return %c0_i32, %c0_i32_0 : i32, i32
  }
  func.func @transform_5(%arg0: i32) -> (i32, i32) {
    %c0_i32 = arith.constant 0 : i32
    %c0_i32_0 = arith.constant 0 : i32
    %c0_i32_1 = arith.constant 0 : i32
    return %c0_i32, %c0_i32_0 : i32, i32
  }
  func.func @transform_6(%arg0: i32) -> (i32, i32) {
    %c0_i32 = arith.constant 0 : i32
    %c0_i32_0 = arith.constant 0 : i32
    %c0_i32_1 = arith.constant 0 : i32
    return %c0_i32, %c0_i32_0 : i32, i32
  }
  func.func @transform_7(%arg0: i32) -> (i32, i32) {
    %c0_i32 = arith.constant 0 : i32
    %c0_i32_0 = arith.constant 0 : i32
    return %arg0, %c0_i32 : i32, i32
  }
}

</mosaic_0001>

<bundles_post_ra>
// kernel: tpu_custom_call.1
= control target key start
LH: loop header
LB: loop body
LE: loop exit
PB: predicated region body
PF: predicated region fallthrough
CT: control target
= control target key end

     0   :  { %12 = vsyncpa [#allocation3], 0  ;;  %s623_s0 = inlined_call_operand.hbm [shape: f32[8,32], index: 0, kind: input, shape index: {}]   ;;  %s624_s1 = inlined_call_operand.hbm [shape: bf16[32,128], index: 1, kind: input, shape index: {}]   ;;  %s625_s2 = inlined_call_operand.vmem [shape: f32[1,128], index: 2, kind: input, shape index: {}]   ;;  %s626_s3 = inlined_call_operand.hbm [shape: bf16[128,128], index: 3, kind: input, shape index: {}]   ;;  %s627_s4 = inlined_call_operand.vmem [shape: f32[1,128], index: 4, kind: input, shape index: {}]   ;;  %s628_s5 = inlined_call_operand.hbm [shape: bf16[128,128], index: 5, kind: input, shape index: {}]   ;;  %s629_s6 = inlined_call_operand.vmem [shape: f32[1,128], index: 6, kind: input, shape index: {}]   ;;  %s630_s7 = inlined_call_operand.hbm [shape: bf16[8,128], index: 7, kind: output, shape index: {}]  }
   0x1   :  { %13 = vsyncpa [#allocation6], 0 }
   0x2   :  { %14 = vsyncpa [#allocation9], 0  ;;  %s31_s26 = sshll.u32 %s624_s1, 4  ;;  %s32_s26 = int_to_ptr.hbm [resolvable:$true] %s31_s26 }
   0x3   :  { %15 = vsyncpa [#allocation4], 0  ;;  %s552_s27 = smov [#allocation5]   ;;  %s21_s8 = sshll.u32 %s623_s0, 4  ;;  %s22_s8 = int_to_ptr.hbm [resolvable:$true] %s21_s8 }
   0x4   :  { %s33_s28 = sshll.u32 %s552_s27, 4  ;;  %s553_s9 = smov 64   ;;  %s34_s28 = int_to_ptr.vmem [resolvable:$true] %s33_s28 }
   0x5   :  { %s554_s10 = smov 4   ;;  %s555_s11 = smov [#allocation2]  }
   0x6   :  { %39 = dma.hbm_to_vmem [thread:$0]  %s32_s26, 256, %s34_s28, [#allocation6], %s553_s9, %s553_s9, %s554_s10  }
   0x7   :  { %s23_s12 = sshll.u32 %s555_s11, 4  ;;  %s46_s15 = sshll.u32 %s626_s3, 4  ;;  %s24_s12 = int_to_ptr.vmem [resolvable:$true] %s23_s12  ;;  %s47_s15 = int_to_ptr.hbm [resolvable:$true] %s46_s15 }
   0x8   :  { %26 = dma.hbm_to_vmem [thread:$0]  %s22_s8, 128, %s24_s12, [#allocation3]  }
   0x9   :  { %s61_s17 = sshll.u32 %s628_s5, 4  ;;  %s556_s18 = smov [#allocation7]   ;;  %s62_s17 = int_to_ptr.hbm [resolvable:$true] %s61_s17 }
   0xa   :  { %s48_s19 = sshll.u32 %s556_s18, 4  ;;  %s557_s0 = smov [#allocation8]   ;;  %s49_s19 = int_to_ptr.vmem [resolvable:$true] %s48_s19 }
   0xb   :  { %54 = dma.hbm_to_vmem [thread:$0]  %s47_s15, 1024, %s49_s19, [#allocation6], %s553_s9, %s553_s9, %s554_s10  }
   0xc   :  { %s63_s20 = sshll.u32 %s557_s0, 4  ;;  %s64_s20 = int_to_ptr.vmem [resolvable:$true] %s63_s20 }
   0xd   :  { %69 = dma.hbm_to_vmem [thread:$0]  %s62_s17, 1024, %s64_s20, [#allocation9], %s553_s9, %s553_s9, %s554_s10  }
   0xe   :  { %544 = dma.done.wait [#allocation3], 128  }
   0xf   :  { %545 = vsyncadd [#allocation3], 4294967168 }
  0x10   :  { %546 = dma.done.wait [#allocation6], 1280  }
  0x11   :  { %547 = vsyncadd [#allocation6], 4294966016 }
  0x12   :  { %548 = dma.done.wait [#allocation9], 1024  }
  0x13   :  { %549 = vsyncadd [#allocation9], 4294966272  ;;  %v395_v0 = vld [vmem:[#allocation5 + $0x8] sm:$0xff]  ;;  %v394_v2 = vld [vmem:[#allocation5] sm:$0xff]  ;;  %vm111_vm0 = vcmask 261120   ;;  %v294_v35 = vlaneseq  ;;  %s558_s24 = smov [#allocation10]  }
  0x14   :  { %v403_v1 = vld [vmem:[#allocation7 + $0x38] sm:$0xff]  ;;  %121 = vmatpush.bf16.msra.mxu0 %v395_v0  ;;  %v89_v3 = vld [vmem:[#allocation2] sm:$0xff]  ;;  %v402_v4 = vld [vmem:[#allocation7 + $0x30] sm:$0xff]  ;;  %s309_s27 = sshll.u32 %s630_s7, 4  ;;  %s310_s27 = int_to_ptr.hbm [resolvable:$true] %s309_s27 }
  0x15   :  { %198 = vmatpush.bf16.msra.mxu1 %v403_v1  ;;  %v90_v5 = vpack.c.bf16 %v89_v3, %v89_v3  ;;  %v401_v6 = vld [vmem:[#allocation7 + $0x28] sm:$0xff]  ;;  %v400_v7 = vld [vmem:[#allocation7 + $0x20] sm:$0xff]  ;;  %v399_v8 = vld [vmem:[#allocation7 + $0x18] sm:$0xff]  ;;  %v295_v37 = vand.u32 127, %v294_v35 }
  0x16   :  { %v398_v9 = vld [vmem:[#allocation7 + $0x10] sm:$0xff]  ;;  %v397_v10 = vld [vmem:[#allocation7 + $0x8] sm:$0xff]  ;;  %v396_v11 = vld [vmem:[#allocation7] sm:$0xff] }
  0x17   :  { %v411_v12 = vld [vmem:[#allocation8 + $0x38] sm:$0xff]  ;;  %v410_v13 = vld [vmem:[#allocation8 + $0x30] sm:$0xff]  ;;  %v409_v14 = vld [vmem:[#allocation8 + $0x28] sm:$0xff]  ;;  %vm296_vm1 = vcmp.ge.s32.totalorder %v295_v37, 8 }
  0x18   :  { %122 = vmatpush.bf16.msra.mxu0 %v394_v2  ;;  %281 = vmatpush.bf16.msra.mxu2 %v411_v12  ;;  %v408_v15 = vld [vmem:[#allocation8 + $0x20] sm:$0xff]  ;;  %v407_v16 = vld [vmem:[#allocation8 + $0x18] sm:$0xff]  ;;  %v406_v17 = vld [vmem:[#allocation8 + $0x10] sm:$0xff] }
  0x19   :  { %199 = vmatpush.bf16.msra.mxu1 %v402_v4  ;;  %v419_v18 = vld [vmem:[%s625_s2] ss:$0 sm:$0xff]  ;;  %v404_v25 = vld [vmem:[#allocation8] sm:$0xff] }
  0x1a   :  { %v405_v24 = vld [vmem:[#allocation8 + $0x8] sm:$0xff] }
  0x1b   :  { %329 = vmatmul.msk.bf16.vlgmr.msra.gmra.mxu0 %vm111_vm0, %v90_v5  ;;  %v420_v26 = vld [vmem:[%s627_s4] ss:$0 sm:$0xff]  ;;  %s307_s4 = sshll.u32 %s558_s24, 4  ;;  %s308_s4 = int_to_ptr.vmem [resolvable:$true] %s307_s4 }
  0x1c   :  { %282 = vmatpush.bf16.msra.mxu2 %v410_v13  ;;  %v421_v32 = vld [vmem:[%s629_s6] ss:$0 sm:$0xff] }
  0x1d   :  { %200 = vmatpush.bf16.msra.mxu1 %v401_v6 }
  0x20   :  { %283 = vmatpush.bf16.msra.mxu2 %v409_v14 }
  0x21   :  { %201 = vmatpush.bf16.msra.mxu1 %v400_v7 }
  0x24   :  { %284 = vmatpush.bf16.msra.mxu2 %v408_v15 }
  0x25   :  { %202 = vmatpush.bf16.msra.mxu1 %v399_v8 }
  0x28   :  { %285 = vmatpush.bf16.msra.mxu2 %v407_v16 }
  0x29   :  { %203 = vmatpush.bf16.msra.mxu1 %v398_v9 }
  0x2c   :  { %286 = vmatpush.bf16.msra.mxu2 %v406_v17 }
  0x2d   :  { %204 = vmatpush.bf16.msra.mxu1 %v397_v10 }
  0x30   :  { %287 = vmatpush.bf16.msra.mxu2 %v405_v24 }
  0x31   :  { %205 = vmatpush.bf16.msra.mxu1 %v396_v11 }
  0x34   :  { %288 = vmatpush.bf16.msra.mxu2 %v404_v25 }
  0x98   :  { %v124_v19 = vpop.f32.mrf.mxu0 }
  0x99   :  { %v125_v20 = vadd.f32 %v419_v18, %v124_v19 }
  0x9b   :  { %v128_v21 = vmax.f32 %v125_v20, 0.0 }
  0x9d   :  { %v129_v22 = vpack.c.bf16 %v128_v21, %v128_v21 }
  0x9f   :  { %206 = vmatmul.bf16.vlgmr.msra.gmra.mxu1 %v129_v22 }
  0xa0   :  { %v126_v23 = vpop.f32.mrf.mxu0 }
 0x11c   :  { %v207_v27 = vpop.f32.mrf.mxu1 }
 0x11d   :  { %v208_v28 = vadd.f32 %v420_v26, %v207_v27 }
 0x11f   :  { %v211_v29 = vmax.f32 %v208_v28, 0.0 }
 0x121   :  { %v212_v30 = vpack.c.bf16 %v211_v29, %v211_v29 }
 0x123   :  { %289 = vmatmul.bf16.vlgmr.msra.gmra.mxu2 %v212_v30 }
 0x124   :  { %v209_v31 = vpop.f32.mrf.mxu1 }
 0x1a6   :  { %v290_v33 = vpop.f32.mrf.mxu2 }
 0x1a7   :  { %v291_v34 = vadd.f32 %v421_v32, %v290_v33 }
 0x1a9   :  { %v297_v36 = vmul.f32 1.442695, %v291_v34 }
 0x1ab   :  { %422 = vpow2.f32 %v297_v36 }
 0x1ae   :  { %v292_v38 = vpop.f32.mrf.mxu2 }
 0x1b1   :  { %v423_v39 = vpop.eup %422 }
 0x1b2   :  { %v299_v40 = vsel %vm296_vm1, %v423_v39, %v291_v34 }
 0x1b3   :  { %v300_v41 = vpack.c.bf16 %v299_v40, %v299_v40 }
 0x1b5   :  { %301 = vst [vmem:[#allocation10] sm:$0xf] %v300_v41 }
 0x1b6   :  { %312 = dma.vmem_to_hbm [thread:$0]  %s308_s4, 64, %s310_s27, [#allocation4]  }
 0x1b7   :  { %550 = dma.done.wait [#allocation4], 64  }
 0x1b8   :  { %551 = vsyncadd [#allocation4], 4294967232 }
 0x1b9   :  { %317 = vsyncpa [#allocation3], 1 }
 0x1ba   :  { %318 = vsyncpa [#allocation6], 1 }
 0x1bb   :  { %319 = vsyncpa [#allocation9], 1 }
 0x1bc   :  { %320 = vsyncpa [#allocation4], 1 }

</bundles_post_ra>
